<compile_context>
chip_gen: v6e
topology: v6e:2x2x1
jax: 0.10.0
libtpu: 0.0.40
codegen_flags: <defaults>
</compile_context>

<pallas_src>
import functools
import math

import jax
import jax.numpy as jnp
from jax import lax
from jax.experimental import pallas as pl
from jax.experimental.pallas import tpu as pltpu


_LANE = 128       # lane width: channel dims padded to multiples of this
_ROW_ALIGN = 16   # sublane alignment for the row tile (covers bf16 packing)


def _round_up(x, m):
    return ((x + m - 1) // m) * m


def _cdiv(a, b):
    return -(-a // b)


def _gelu_exact(x):
    # Matches torch.nn.GELU() default (erf formulation); evaluated in f32.
    return 0.5 * x * (1.0 + lax.erf(x * (1.0 / math.sqrt(2.0))))


def _make_kernel(compute_dtype, approx_gelu, num_k):
    def kernel(x_ref, w1_ref, b1_ref, w2_ref, b2_ref, o_ref, acc_ref=None):
        # x arrives in its original dtype; cast in VMEM (saves a wrapper HBM pass).
        x = x_ref[...].astype(compute_dtype)                               # (tm, Cp_in)
        h = jnp.dot(x, w1_ref[...], preferred_element_type=jnp.float32)    # (tm, hk)
        h = h + b1_ref[...]                                                # (1, hk) bcast
        if approx_gelu:
            # tanh GELU -> EUP slot; elementwise in compute dtype (bf16 on v6e/v7x).
            h = jax.nn.gelu(h.astype(compute_dtype), approximate=True)
            h = h.astype(compute_dtype)
        else:
            # Exact erf GELU (bit-matches torch.nn.GELU() default) in f32.
            h = _gelu_exact(h).astype(compute_dtype)
        # TODO(synk): nn.Dropout with p > 0 (training-mode RNG masking) not implemented;
        #             the module's drop=0.0 makes both dropouts identities.
        part = jnp.dot(h, w2_ref[...], preferred_element_type=jnp.float32)  # (tm, Cp_out)

        if num_k == 1:
            o_ref[...] = (part + b2_ref[...]).astype(o_ref.dtype)
        else:
            k = pl.program_id(1)

            @pl.when(k == 0)
            def _():
                acc_ref[...] = jnp.zeros_like(acc_ref)

            acc_ref[...] += part

            @pl.when(k == pl.num_programs(1) - 1)
            def _():
                o_ref[...] = (acc_ref[...] + b2_ref[...]).astype(o_ref.dtype)

    return kernel


def mlp_pallas(x, w1, b1, w2, b2, *, tm=512, hk_target=2048,
               compute_dtype=jnp.bfloat16, out_dtype=None,
               gelu_approximate=None, channels_first=False):
    """Fused MLP acting on the channel axis.

    channels_first=False: x is (..., C_in) (nn.Linear on last dim).
    channels_first=True : x is (B, C_in, H, W) (Linear2d / 1x1 conv).
    w1: (C_in, hidden), w2: (hidden, C_out), b1: (hidden,), b2: (C_out,).
    gelu_approximate=None -> tanh GELU iff compute_dtype != float32.
    """
    if channels_first:
        # TODO(synk): the two moveaxis copies are extra full-HBM passes; a fused,
        #             layout-aware index_map would avoid them for the Linear2d path.
        x_cl = jnp.moveaxis(x, 1, -1)
        out = mlp_pallas(x_cl, w1, b1, w2, b2, tm=tm, hk_target=hk_target,
                         compute_dtype=compute_dtype, out_dtype=out_dtype,
                         gelu_approximate=gelu_approximate, channels_first=False)
        return jnp.moveaxis(out, -1, 1)

    out_dtype = jnp.dtype(x.dtype) if out_dtype is None else jnp.dtype(out_dtype)
    if gelu_approximate is None:
        approx_gelu = jnp.dtype(compute_dtype) != jnp.dtype(jnp.float32)
    else:
        approx_gelu = bool(gelu_approximate)

    *lead, C_in = x.shape
    hidden = w1.shape[1]
    C_out = w2.shape[1]
    N = 1
    for d in lead:
        N *= d

    # Lane-dense channel padding (zero pad -> math unchanged: GELU(0)=0 and padded
    # W2 rows are zero, so padded hidden columns contribute nothing).
    Cp_in = _round_up(C_in, _LANE)
    Hp = _round_up(hidden, _LANE)
    Cp_out = _round_up(C_out, _LANE)

    # Row tile: cap so there are >= 4 row blocks (both v7x TCs busy + pipelining
    # even at small N), sublane-aligned.
    tm_eff = max(_ROW_ALIGN, min(_round_up(tm, _ROW_ALIGN),
                                 _round_up(_cdiv(N, 4), _ROW_ALIGN)))

    # Hidden-chunk size: largest multiple of 128 dividing Hp that is <= limit.
    def _best_hk(limit):
        m = Hp // _LANE
        best = _LANE
        for d in range(1, m + 1):
            if m % d == 0 and d * _LANE <= limit:
                best = d * _LANE
        return best

    hk = _best_hk(max(int(hk_target), _LANE))

    x_item = jnp.dtype(x.dtype).itemsize
    c_item = jnp.dtype(compute_dtype).itemsize
    o_item = out_dtype.itemsize

    # Per-generation VMEM capacity (v5e/v6e 128 MiB, v7x 64 MiB per TC), with headroom.
    try:
        vmem_cap = int(pltpu.get_tpu_info().vmem_capacity_bytes)
    except Exception:
        vmem_cap = 64 << 20
    usable = max(vmem_cap - (8 << 20), 16 << 20)

    def _budget(tm_e, hk_e):
        nk = Hp // hk_e
        nbw = 1 if nk == 1 else 2                                  # weight buffers
        return (2 * tm_e * Cp_in * x_item                          # x tiles (2-buf)
                + nbw * (Cp_in * hk_e + hk_e * Cp_out) * c_item    # W1/W2 chunks
                + nbw * hk_e * 4 + Cp_out * 4                      # b1 chunks + b2
                + 2 * tm_e * Cp_out * o_item                       # out tiles (2-buf)
                + (tm_e * Cp_out * 4 if nk > 1 else 0)             # f32 acc scratch
                + tm_e * Cp_in * c_item                            # x cast temp
                + tm_e * hk_e * (4 + c_item))                      # h (f32 + compute)

    # Shrink hk first, then tm, until the working set fits.
    while _budget(tm_eff, hk) + (2 << 20) > usable:
        if hk > _LANE:
            hk = _best_hk(hk - _LANE)
        elif tm_eff > _ROW_ALIGN:
            tm_eff = max(_ROW_ALIGN, _round_up(tm_eff // 2, _ROW_ALIGN))
        else:
            break

    num_k = Hp // hk
    Np = _round_up(N, tm_eff)
    grid = (Np // tm_eff, num_k)

    # Operand prep: x stays in its original dtype (cast happens in-kernel); pads are
    # only materialized when actually needed.
    x2d = x.reshape(N, C_in)
    if (Np - N) or (Cp_in - C_in):
        x2d = jnp.pad(x2d, ((0, Np - N), (0, Cp_in - C_in)))
    w1p = w1.astype(compute_dtype)
    if (Cp_in - C_in) or (Hp - hidden):
        w1p = jnp.pad(w1p, ((0, Cp_in - C_in), (0, Hp - hidden)))
    w2p = w2.astype(compute_dtype)
    if (Hp - hidden) or (Cp_out - C_out):
        w2p = jnp.pad(w2p, ((0, Hp - hidden), (0, Cp_out - C_out)))
    b1p = jnp.pad(b1.astype(jnp.float32), ((0, Hp - hidden),)).reshape(1, Hp)
    b2p = jnp.pad(b2.astype(jnp.float32), ((0, Cp_out - C_out),)).reshape(1, Cp_out)

    vmem_limit = int(min(max(_budget(tm_eff, hk) + (4 << 20), 32 << 20), usable))

    kernel = _make_kernel(jnp.dtype(compute_dtype), approx_gelu, num_k)
    scratch = [] if num_k == 1 else [pltpu.VMEM((tm_eff, Cp_out), jnp.float32)]

    def _run(single_buffer_constants):
        # Constant blocks never change -> single buffer (halves resident-weight VMEM).
        const_kw = ({"pipeline_mode": pl.Buffered(1)}
                    if single_buffer_constants else {})
        w_kw = const_kw if num_k == 1 else {}   # streamed weight chunks stay 2-buffered
        return pl.pallas_call(
            kernel,
            out_shape=jax.ShapeDtypeStruct((Np, Cp_out), out_dtype),
            grid_spec=pltpu.PrefetchScalarGridSpec(
                num_scalar_prefetch=0,
                grid=grid,
                in_specs=[
                    pl.BlockSpec((tm_eff, Cp_in), lambda i, k: (i, 0)),      # x rows
                    pl.BlockSpec((Cp_in, hk), lambda i, k: (0, k), **w_kw),  # W1 chunk
                    pl.BlockSpec((1, hk), lambda i, k: (0, k), **w_kw),      # b1 chunk
                    pl.BlockSpec((hk, Cp_out), lambda i, k: (k, 0), **w_kw), # W2 chunk
                    pl.BlockSpec((1, Cp_out), lambda i, k: (0, 0), **const_kw),  # b2
                ],
                out_specs=pl.BlockSpec((tm_eff, Cp_out), lambda i, k: (i, 0)),
                scratch_shapes=scratch,
            ),
            compiler_params=pltpu.CompilerParams(
                dimension_semantics=("parallel", "arbitrary"),
                vmem_limit_bytes=vmem_limit,
            ),
        )(x2d, w1p, b1p, w2p, b2p)

    try:
        out2d = _run(True)
    except Exception:
        # Safety net: if this jax version rejects Buffered(1), fall back to plain
        # (double-buffered) specs — always valid, just a little more VMEM.
        out2d = _run(False)

    out = out2d
    if (Np - N) or (Cp_out - C_out):
        out = out[:N, :C_out]
    return out.reshape(*lead, C_out)


def mlp_reference(x, w1, b1, w2, b2):
    h = jnp.tensordot(x, w1, axes=[[-1], [0]]) + b1
    h = _gelu_exact(h)
    return jnp.tensordot(h, w2, axes=[[-1], [0]]) + b2


if __name__ == "__main__":
    # Small shapes consistent with the module: in_features=16, hidden_features=32,
    # out_features=16, channels-last input (B, H, W, C) = (2, 8, 8, 16).
    B, Hs, Ws = 2, 8, 8
    in_features, hidden_features, out_features = 16, 32, 16

    key = jax.random.PRNGKey(0)
    kx, k1, kb1, k2, kb2, k3 = jax.random.split(key, 6)

    x = jax.random.normal(kx, (B, Hs, Ws, in_features), dtype=jnp.float32)

    # nn.Linear-style init ranges; weights stored as (in, hidden) for x @ W.
    bound1 = 1.0 / math.sqrt(in_features)
    w1 = jax.random.uniform(k1, (in_features, hidden_features),
                            minval=-bound1, maxval=bound1, dtype=jnp.float32)
    b1 = jax.random.uniform(kb1, (hidden_features,),
                            minval=-bound1, maxval=bound1, dtype=jnp.float32)

    bound2 = 1.0 / math.sqrt(hidden_features)
    w2 = jax.random.uniform(k2, (hidden_features, out_features),
                            minval=-bound2, maxval=bound2, dtype=jnp.float32)
    b2 = jax.random.uniform(kb2, (out_features,),
                            minval=-bound2, maxval=bound2, dtype=jnp.float32)

    ref = mlp_reference(x, w1, b1, w2, b2)

    # 1) f32 compute path (exact erf GELU): matches the all-f32 PyTorch forward.
    out_f32 = jax.block_until_ready(
        mlp_pallas(x, w1, b1, w2, b2, compute_dtype=jnp.float32))
    assert out_f32.shape == (B, Hs, Ws, out_features)
    assert jnp.allclose(out_f32, ref, atol=1e-4, rtol=1e-4), "f32 path mismatch"

    # 2) Default bf16 perf path (tanh GELU, f32 accumulation): looser tolerance
    #    covers bf16 rounding + tanh-vs-erf GELU difference (~1e-3).
    out_bf16 = jax.block_until_ready(mlp_pallas(x, w1, b1, w2, b2))
    assert out_bf16.shape == (B, Hs, Ws, out_features)
    assert jnp.allclose(out_bf16.astype(jnp.float32), ref, atol=5e-2, rtol=5e-2), \
        "bf16 path mismatch"

    # 3) channels_first (Linear2d / 1x1-conv) layout wrapper reuses the same kernel.
    x_cf = jnp.moveaxis(x, -1, 1)                      # (B, C, H, W)
    out_cf = jax.block_until_ready(
        mlp_pallas(x_cf, w1, b1, w2, b2, compute_dtype=jnp.float32,
                   channels_first=True))
    assert out_cf.shape == (B, out_features, Hs, Ws)
    assert jnp.allclose(jnp.moveaxis(out_cf, 1, -1), ref, atol=1e-4, rtol=1e-4), \
        "channels_first path mismatch"

    # 4) Hidden-chunked accumulator path (num_k > 1) exercised at small shapes.
    hidden_big = 256
    b3 = 1.0 / math.sqrt(in_features)
    w1b = jax.random.uniform(k3, (in_features, hidden_big),
                             minval=-b3, maxval=b3, dtype=jnp.float32)
    b1b = jnp.zeros((hidden_big,), jnp.float32)
    b4 = 1.0 / math.sqrt(hidden_big)
    w2b = jax.random.uniform(k2, (hidden_big, out_features),
                             minval=-b4, maxval=b4, dtype=jnp.float32)
    refb = mlp_reference(x, w1b, b1b, w2b, b2)
    out_chunk = jax.block_until_ready(
        mlp_pallas(x, w1b, b1b, w2b, b2, compute_dtype=jnp.float32, hk_target=128))
    assert jnp.allclose(out_chunk, refb, atol=1e-4, rtol=1e-4), \
        "hidden-chunked path mismatch"

    print("KERNEL_OK")
</pallas_src>

<mosaic_0001>
module attributes {stable_mosaic.version = 11 : i64} {
  func.func @kernel(%arg0: i32, %arg1: i32, %arg2: memref<32x128xf32, #tpu.memory_space<vmem>>, %arg3: memref<128x128xf32, #tpu.memory_space<vmem>>, %arg4: memref<1x128xf32, #tpu.memory_space<vmem>>, %arg5: memref<128x128xf32, #tpu.memory_space<vmem>>, %arg6: memref<1x128xf32, #tpu.memory_space<vmem>>, %arg7: memref<32x128xf32, #tpu.memory_space<vmem>>) attributes {dimension_semantics = [#tpu.dimension_semantics<parallel>, #tpu.dimension_semantics<arbitrary>], iteration_bounds = array<i64: 4, 1>, scalar_prefetch = 0 : i64, scratch_operands = 0 : i64, tpu.core_type = #tpu.core_type<tc>, window_params = [{transform_indices = @transform_0, window_bounds = array<i64: 32, 128>}, {pipeline_mode = #tpu.pipeline_mode<synchronous>, transform_indices = @transform_1, window_bounds = array<i64: 128, 128>}, {pipeline_mode = #tpu.pipeline_mode<synchronous>, transform_indices = @transform_2, window_bounds = array<i64: 1, 128>}, {pipeline_mode = #tpu.pipeline_mode<synchronous>, transform_indices = @transform_3, window_bounds = array<i64: 128, 128>}, {pipeline_mode = #tpu.pipeline_mode<synchronous>, transform_indices = @transform_4, window_bounds = array<i64: 1, 128>}, {transform_indices = @transform_5, window_bounds = array<i64: 32, 128>}]} {
    %c0 = arith.constant 0 : index
    %c0_0 = arith.constant 0 : index
    %0 = vector.load %arg2[%c0, %c0_0] : memref<32x128xf32, #tpu.memory_space<vmem>>, vector<32x128xf32>
    %c0_1 = arith.constant 0 : index
    %c0_2 = arith.constant 0 : index
    %1 = vector.load %arg3[%c0_1, %c0_2] : memref<128x128xf32, #tpu.memory_space<vmem>>, vector<128x128xf32>
    %cst = arith.constant dense<0.000000e+00> : vector<32x128xf32>
    %2 = tpu.matmul %0, %1, %cst {dimension_numbers = #tpu.dot_dimension_numbers<[1], [0], [0], [1], [0, 0, 1, 1], [], []>} : vector<32x128xf32>, vector<128x128xf32>, vector<32x128xf32> -> vector<32x128xf32>
    %c0_3 = arith.constant 0 : index
    %c0_4 = arith.constant 0 : index
    %3 = vector.load %arg4[%c0_3, %c0_4] : memref<1x128xf32, #tpu.memory_space<vmem>>, vector<1x128xf32>
    %4 = vector.broadcast %3 : vector<1x128xf32> to vector<32x128xf32>
    %5 = arith.addf %2, %4 : vector<32x128xf32>
    %cst_5 = arith.constant 5.000000e-01 : f32
    %6 = vector.broadcast %cst_5 : f32 to vector<32x128xf32>
    %7 = arith.mulf %6, %5 : vector<32x128xf32>
    %cst_6 = arith.constant 0.707106769 : f32
    %8 = vector.broadcast %cst_6 : f32 to vector<32x128xf32>
    %9 = arith.mulf %5, %8 : vector<32x128xf32>
    %10 = math.erf %9 : vector<32x128xf32>
    %cst_7 = arith.constant 1.000000e+00 : f32
    %11 = vector.broadcast %cst_7 : f32 to vector<32x128xf32>
    %12 = arith.addf %11, %10 : vector<32x128xf32>
    %13 = arith.mulf %7, %12 : vector<32x128xf32>
    %c0_8 = arith.constant 0 : index
    %c0_9 = arith.constant 0 : index
    %14 = vector.load %arg5[%c0_8, %c0_9] : memref<128x128xf32, #tpu.memory_space<vmem>>, vector<128x128xf32>
    %cst_10 = arith.constant dense<0.000000e+00> : vector<32x128xf32>
    %15 = tpu.matmul %13, %14, %cst_10 {dimension_numbers = #tpu.dot_dimension_numbers<[1], [0], [0], [1], [0, 0, 1, 1], [], []>} : vector<32x128xf32>, vector<128x128xf32>, vector<32x128xf32> -> vector<32x128xf32>
    %c0_11 = arith.constant 0 : index
    %c0_12 = arith.constant 0 : index
    %16 = vector.load %arg6[%c0_11, %c0_12] : memref<1x128xf32, #tpu.memory_space<vmem>>, vector<1x128xf32>
    %17 = vector.broadcast %16 : vector<1x128xf32> to vector<32x128xf32>
    %18 = arith.addf %15, %17 : vector<32x128xf32>
    %c0_13 = arith.constant 0 : index
    %c0_14 = arith.constant 0 : index
    %19 = vector.load %arg7[%c0_13, %c0_14] : memref<32x128xf32, #tpu.memory_space<vmem>>, vector<32x128xf32>
    tpu.vector_store %arg7[%c0_13, %c0_14], %18 {strides = array<i32>} : memref<32x128xf32, #tpu.memory_space<vmem>>, vector<32x128xf32>,
    return
  }
  func.func @transform_0(%arg0: i32, %arg1: i32) -> (i32, i32) {
    %c0_i32 = arith.constant 0 : i32
    %c0_i32_0 = arith.constant 0 : i32
    return %arg0, %c0_i32 : i32, i32
  }
  func.func @transform_1(%arg0: i32, %arg1: i32) -> (i32, i32) {
    %c0_i32 = arith.constant 0 : i32
    %c0_i32_0 = arith.constant 0 : i32
    return %c0_i32, %arg1 : i32, i32
  }
  func.func @transform_2(%arg0: i32, %arg1: i32) -> (i32, i32) {
    %c0_i32 = arith.constant 0 : i32
    %c0_i32_0 = arith.constant 0 : i32
    return %c0_i32, %arg1 : i32, i32
  }
  func.func @transform_3(%arg0: i32, %arg1: i32) -> (i32, i32) {
    %c0_i32 = arith.constant 0 : i32
    %c0_i32_0 = arith.constant 0 : i32
    return %arg1, %c0_i32 : i32, i32
  }
  func.func @transform_4(%arg0: i32, %arg1: i32) -> (i32, i32) {
    %c0_i32 = arith.constant 0 : i32
    %c0_i32_0 = arith.constant 0 : i32
    %c0_i32_1 = arith.constant 0 : i32
    return %c0_i32, %c0_i32_0 : i32, i32
  }
  func.func @transform_5(%arg0: i32, %arg1: i32) -> (i32, i32) {
    %c0_i32 = arith.constant 0 : i32
    %c0_i32_0 = arith.constant 0 : i32
    return %arg0, %c0_i32 : i32, i32
  }
}

module attributes {stable_mosaic.version = 11 : i64} {
  func.func @kernel(%arg0: i32, %arg1: i32, %arg2: memref<32x128xf32, #tpu.memory_space<vmem>>, %arg3: memref<128x128xf32, #tpu.memory_space<vmem>>, %arg4: memref<1x128xf32, #tpu.memory_space<vmem>>, %arg5: memref<128x128xf32, #tpu.memory_space<vmem>>, %arg6: memref<1x128xf32, #tpu.memory_space<vmem>>, %arg7: memref<32x128xf32, #tpu.memory_space<vmem>>) attributes {dimension_semantics = [#tpu.dimension_semantics<parallel>, #tpu.dimension_semantics<arbitrary>], iteration_bounds = array<i64: 4, 1>, scalar_prefetch = 0 : i64, scratch_operands = 0 : i64, tpu.core_type = #tpu.core_type<tc>, window_params = [{transform_indices = @transform_0, window_bounds = array<i64: 32, 128>}, {transform_indices = @transform_1, window_bounds = array<i64: 128, 128>}, {transform_indices = @transform_2, window_bounds = array<i64: 1, 128>}, {transform_indices = @transform_3, window_bounds = array<i64: 128, 128>}, {pipeline_mode = #tpu.pipeline_mode<synchronous>, transform_indices = @transform_4, window_bounds = array<i64: 1, 128>}, {transform_indices = @transform_5, window_bounds = array<i64: 32, 128>}]} {
    %c0 = arith.constant 0 : index
    %c0_0 = arith.constant 0 : index
    %0 = vector.load %arg2[%c0, %c0_0] : memref<32x128xf32, #tpu.memory_space<vmem>>, vector<32x128xf32>
    %c0_1 = arith.constant 0 : index
    %c0_2 = arith.constant 0 : index
    %1 = vector.load %arg3[%c0_1, %c0_2] : memref<128x128xf32, #tpu.memory_space<vmem>>, vector<128x128xf32>
    %cst = arith.constant dense<0.000000e+00> : vector<32x128xf32>
    %2 = tpu.matmul %0, %1, %cst {dimension_numbers = #tpu.dot_dimension_numbers<[1], [0], [0], [1], [0, 0, 1, 1], [], []>} : vector<32x128xf32>, vector<128x128xf32>, vector<32x128xf32> -> vector<32x128xf32>
    %c0_3 = arith.constant 0 : index
    %c0_4 = arith.constant 0 : index
    %3 = vector.load %arg4[%c0_3, %c0_4] : memref<1x128xf32, #tpu.memory_space<vmem>>, vector<1x128xf32>
    %4 = vector.broadcast %3 : vector<1x128xf32> to vector<32x128xf32>
    %5 = arith.addf %2, %4 : vector<32x128xf32>
    %cst_5 = arith.constant 5.000000e-01 : f32
    %6 = vector.broadcast %cst_5 : f32 to vector<32x128xf32>
    %7 = arith.mulf %6, %5 : vector<32x128xf32>
    %cst_6 = arith.constant 0.707106769 : f32
    %8 = vector.broadcast %cst_6 : f32 to vector<32x128xf32>
    %9 = arith.mulf %5, %8 : vector<32x128xf32>
    %10 = math.erf %9 : vector<32x128xf32>
    %cst_7 = arith.constant 1.000000e+00 : f32
    %11 = vector.broadcast %cst_7 : f32 to vector<32x128xf32>
    %12 = arith.addf %11, %10 : vector<32x128xf32>
    %13 = arith.mulf %7, %12 : vector<32x128xf32>
    %c0_8 = arith.constant 0 : index
    %c0_9 = arith.constant 0 : index
    %14 = vector.load %arg5[%c0_8, %c0_9] : memref<128x128xf32, #tpu.memory_space<vmem>>, vector<128x128xf32>
    %cst_10 = arith.constant dense<0.000000e+00> : vector<32x128xf32>
    %15 = tpu.matmul %13, %14, %cst_10 {dimension_numbers = #tpu.dot_dimension_numbers<[1], [0], [0], [1], [0, 0, 1, 1], [], []>} : vector<32x128xf32>, vector<128x128xf32>, vector<32x128xf32> -> vector<32x128xf32>
    %c0_11 = arith.constant 0 : index
    %c0_12 = arith.constant 0 : index
    %16 = vector.load %arg6[%c0_11, %c0_12] : memref<1x128xf32, #tpu.memory_space<vmem>>, vector<1x128xf32>
    %17 = vector.broadcast %16 : vector<1x128xf32> to vector<32x128xf32>
    %18 = arith.addf %15, %17 : vector<32x128xf32>
    %c0_13 = arith.constant 0 : index
    %c0_14 = arith.constant 0 : index
    %19 = vector.load %arg7[%c0_13, %c0_14] : memref<32x128xf32, #tpu.memory_space<vmem>>, vector<32x128xf32>
    tpu.vector_store %arg7[%c0_13, %c0_14], %18 {strides = array<i32>} : memref<32x128xf32, #tpu.memory_space<vmem>>, vector<32x128xf32>,
    return
  }
  func.func @transform_0(%arg0: i32, %arg1: i32) -> (i32, i32) {
    %c0_i32 = arith.constant 0 : i32
    %c0_i32_0 = arith.constant 0 : i32
    return %arg0, %c0_i32 : i32, i32
  }
  func.func @transform_1(%arg0: i32, %arg1: i32) -> (i32, i32) {
    %c0_i32 = arith.constant 0 : i32
    %c0_i32_0 = arith.constant 0 : i32
    return %c0_i32, %arg1 : i32, i32
  }
  func.func @transform_2(%arg0: i32, %arg1: i32) -> (i32, i32) {
    %c0_i32 = arith.constant 0 : i32
    %c0_i32_0 = arith.constant 0 : i32
    return %c0_i32, %arg1 : i32, i32
  }
  func.func @transform_3(%arg0: i32, %arg1: i32) -> (i32, i32) {
    %c0_i32 = arith.constant 0 : i32
    %c0_i32_0 = arith.constant 0 : i32
    return %arg1, %c0_i32 : i32, i32
  }
  func.func @transform_4(%arg0: i32, %arg1: i32) -> (i32, i32) {
    %c0_i32 = arith.constant 0 : i32
    %c0_i32_0 = arith.constant 0 : i32
    %c0_i32_1 = arith.constant 0 : i32
    return %c0_i32, %c0_i32_0 : i32, i32
  }
  func.func @transform_5(%arg0: i32, %arg1: i32) -> (i32, i32) {
    %c0_i32 = arith.constant 0 : i32
    %c0_i32_0 = arith.constant 0 : i32
    return %arg0, %c0_i32 : i32, i32
  }
}

</mosaic_0001>

<bundles_post_ra>
// kernel: tpu_custom_call.1
= control target key start
LH: loop header
LB: loop body
LE: loop exit
PB: predicated region body
PF: predicated region fallthrough
CT: control target
= control target key end

     0   :  { %s1340_s0 = inlined_call_operand.hbm [shape: f32[128,128], index: 0, kind: input, shape index: {}]   ;;  %s1341_s1 = inlined_call_operand.hbm [shape: f32[128,128], index: 1, kind: input, shape index: {}]   ;;  %s1342_s2 = inlined_call_operand.vmem [shape: f32[1,128], index: 2, kind: input, shape index: {}]   ;;  %s1343_s3 = inlined_call_operand.hbm [shape: f32[128,128], index: 3, kind: input, shape index: {}]   ;;  %s1344_s4 = inlined_call_operand.vmem [shape: f32[1,128], index: 4, kind: input, shape index: {}]   ;;  %s1345_s5 = inlined_call_operand.hbm [shape: f32[128,128], index: 5, kind: output, shape index: {}]  }
   0x1   :  { %1348 = sst [smem:[#allocation12_spill]] %s1341_s1 }
   0x2   :  { %10 = vsyncpa [#allocation3], 0 }
   0x3   :  { %12 = vsyncpa [#allocation3 + $0x1], 0 }
   0x4   :  { %13 = vsyncpa [#allocation6], 0 }
   0x5   :  { %14 = vsyncpa [#allocation4], 0 }
   0x6   :  { %16 = vsyncpa [#allocation4 + $0x1], 0  ;;  %s1129_s18 = smov 0   ;;  %s1131_s19 = smov 0  }
   0x7   :  { %s1133_s20 = smov 0   ;;  %s1135_s21 = smov 0  }
   0x8   :  { %s1137_s22 = smov 0   ;;  %s1139_s23 = smov 0  }
   0x9 LB: > { %s690_s24 = sadd.s32 4294967295, %s1089_s23   ;;  %s691_s25 = sadd.s32 4294967294, %s1089_s23   ;;  %s1089_s23 = sphi %s1139_s23, %s22_s23   ;;  %s1085_s22 = sphi %s1137_s22, %s1365_s22   ;;  %s1081_s21 = sphi %s1135_s21, %s1364_s21   ;;  %s1077_s20 = sphi %s1133_s20, %s1363_s20   ;;  %s1073_s19 = sphi %s1131_s19, %s1362_s19   ;;  %s1069_s18 = sphi %s1129_s18, %s1361_s18  }
   0xa   : > { %p54_p0 = scmp.ne.s32.totalorder %s1073_s19, %s1069_s18  ;;  %p1163_p1 = scmp.eq.s32.totalorder %s690_s24, 0 }
   0xb   : > { %p1167_p2 = scmp.eq.s32.totalorder %s690_s24, 3  ;;  %p183_p3 = scmp.eq.s32.totalorder %s691_s25, 3 }
   0xc   : > { %p1173_p4 = por %p1163_p1, %p54_p0  ;;  %p692_p5 = scmp.ge.s32.totalorder %s1089_s23, 1 }
   0xd   : > { %p1178_p6 = por %p183_p3, %p54_p0  ;;  %p190_p7 = scmp.lt.s32.totalorder %s1089_s23, 5 }
   0xe   : > { %s1091_s6 = smov [#allocation5]   ;;  %s1092_s9 = smov [#allocation7]  }
   0xf   : > { %s1352_s29 = scalar_select %p1178_p6, 1, 0 }
  0x10   : > { %p1183_p8 = pnand %p692_p5, %p190_p7  ;;  %s204_s7 = sshll.u32 %s1091_s6, 4  ;;  %s205_s7 = int_to_ptr.vmem [resolvable:$true] %s204_s7 }
  0x11   : > { %s226_s10 = sshll.u32 %s1092_s9, 4  ;;  %s936_s11 = scalar_lea.vmem %s205_s7, 2048  ;;  %s227_s10 = int_to_ptr.vmem [resolvable:$true] %s226_s10 }
  0x12   : > { %p842_p9 = pneg %p1183_p8  ;;  %p937_p12 = scmp.ne.s32.totalorder %s205_s7, %s936_s11 }
  0x13   : > { %p944_p3 = scmp.lt.s32.totalorder %s205_s7, %s205_s7  ;;  %p945_p5 = scmp.lt.s32.totalorder %s936_s11, %s936_s11 }
  0x14   : > { %p1191_p10 = pnand %p842_p9, %p1163_p1 }
  0x15   : > { %p946_p7 = por %p945_p5, %p944_p3 }
  0x16   : > { %p927_p11 = pneg %p1191_p10 }
  0x18   : > { %p939_p13 = pnand %p937_p12, %p927_p11 }
  0x1a   : > { %p940_p0 = pneg %p939_p13 }
  0x1c   : > { %p947_p9 = pnand %p946_p7, %p940_p0 }
  0x1e   : > { %950 = shalt.err (!%p947_p9)
}
  0x1f   : > { %s1346_s12 = smov 128   ;;  %s1347_s13 = smov 8  }
  0x20   : > { %s1355_s1 = sld [smem:[#allocation12_spill]]  ;;  %s962_s16 = scalar_lea.vmem %s227_s10, 2048 }
  0x21   : > { %p963_p12 = scmp.ne.s32.totalorder %s227_s10, %s962_s16  ;;  %p970_p0 = scmp.lt.s32.totalorder %s227_s10, %s227_s10 }
  0x22   : > { %p971_p5 = scmp.lt.s32.totalorder %s962_s16, %s962_s16 }
  0x23   : > { %p965_p13 = pnand %p963_p12, %p927_p11 }
  0x24   : > { %p972_p7 = por %p971_p5, %p970_p0 }
  0x25   : > { %p966_p3 = pneg %p965_p13 }
  0x26   : > { %845 = dma.hbm_to_vmem [thread:$0]  (!%p1191_p10), %s1355_s1, 2048, %s205_s7, [#allocation6], %s1346_s12, %s1346_s12, %s1347_s13  }
  0x27   : > { %p973_p9 = pnand %p972_p7, %p966_p3 }
  0x29   : > { %976 = shalt.err (!%p973_p9)
}
  0x2a   : > { %848 = dma.hbm_to_vmem [thread:$0]  (!%p1191_p10), %s1343_s3, 2048, %s227_s10, [#allocation6], %s1346_s12, %s1346_s12, %s1347_s13  }
  0x2b   : > { %s34_s25 = sadd.s32 1, %s1085_s22  ;;  %s41_s6 = sadd.s32 1, %s1077_s20 }
  0x2c   : > { %p36_p11 = scmp.ge.s32.totalorder %s34_s25, 4  ;;  %p48_p12 = scmp.ne.s32.totalorder %s1077_s20, %s1073_s19 }
  0x2d   : > { %p49_p13 = scmp.eq.s32.totalorder %s1089_s23, 0  ;;  %p859_p3 = scmp.lt.s32.totalorder %s1089_s23, 4 }
  0x2e   : > { %s1367_s25 = smov (%p36_p11, %s34_s25), 0  ;;  %p1229_p5 = por %p1167_p2, %p48_p12 }
  0x2f   : > { %p50_p0 = por %p49_p13, %p48_p12  ;;  %s38_s8 = ssub.s32 %s1085_s22, %s1367_s25 }
  0x30   : > { %s243_s9 = sand.u32 1, %s1077_s20   ;;  %p39_p7 = scmp.eq.s32.totalorder %s38_s8, 0 }
  0x31   : > { %s697_s10 = sshll.u32 %s243_s9, 5  ;;  %s712_s11 = sshll.u32 %s1085_s22, 9 }
  0x32   : > { %s1238_s14 = scalar_select %p39_p7, %s1077_s20, %s41_s6  }
  0x33   : > { %s253_s17 = scalar_lea.hbm %s1340_s0, %s712_s11  ;;  %s247_s24 = scalar_lea.vmem [#allocation2], %s697_s10 }
  0x34   : > { %s254_s12 = sshll.u32 %s247_s24, 4  ;;  %p1245_p10 = pnand %p859_p3, %p50_p0  ;;  %s255_s12 = int_to_ptr.vmem [resolvable:$true] %s254_s12 }
  0x35   : > { %s244_s13 = scalar_lea.sflag [#allocation3], %s243_s9  ;;  %s990_s8 = scalar_lea.vmem %s255_s12, 512 }
  0x36   : > { %p979_p2 = pneg %p1245_p10  ;;  %p991_p9 = scmp.ne.s32.totalorder %s255_s12, %s990_s8 }
  0x37   : > { %s1095_s6 = smov [#allocation2]  }
  0x38   : > { %p993_p11 = pnand %p991_p9, %p979_p2  ;;  %s995_s1 = sshll.u32 %s1095_s6, 4  ;;  %s996_s1 = int_to_ptr.vmem [resolvable:$false] %s995_s1 }
  0x39   : > { %s997_s11 = scalar_lea.vmem %s996_s1, 1024  ;;  %p998_p13 = scmp.lt.s32.totalorder %s255_s12, %s996_s1 }
  0x3a   : > { %p994_p12 = pneg %p993_p11  ;;  %p999_p7 = scmp.lt.s32.totalorder %s997_s11, %s990_s8 }
  0x3c   : > { %p1000_p6 = por %p999_p7, %p998_p13 }
  0x3e   : > { %p1001_p3 = pnand %p1000_p6, %p994_p12 }
  0x40   : > { %1004 = shalt.err (!%p1001_p3)
}
  0x41   : > { %s1358_s10 = smov 8   ;;  %s1359_s15 = smov 128  }
  0x42   : > { %852 = dma.hbm_to_vmem [thread:$0]  (!%p1245_p10), %s253_s17, 512, %s255_s12, %s244_s13, %s1359_s15, %s1359_s15, %s1358_s10  }
  0x43   : > { %266 = sbr.rel (%p1183_p8) target bundleno = 541 (0x21d), region = 40  ;;  %s1259_s9 = sand.u32 (!%p1183_p8), 1, %s1073_s19  }
  0x44   : > { %s701_s1 = sshll.u32 (!%p1183_p8), %s1259_s9, 5  ;;  %s269_s16 = scalar_lea.sflag (!%p1183_p8), [#allocation3], %s1259_s9 }
  0x45   : > { %s1265_s24 = scalar_lea.vmem (!%p1183_p8), [#allocation2], %s701_s1 }
  0x48   : > { %1056 = dma.done.wait (%p1173_p4), %s269_s16, 512  }
  0x49   : > { %1058 = vsyncadd (%p1173_p4), %s269_s16, 4294966784 }
  0x4a   : > { %1060 = dma.done.wait (%p1163_p1), [#allocation6], 4096  }
  0x4b   : > { %1062 = vsyncadd (%p1163_p1), [#allocation6], 4294963200  ;;  %v335_v0 = vld [vmem:[#allocation5 + $0x78] sm:$0xff]  ;;  %v334_v1 = vld [vmem:[#allocation5 + $0x70] sm:$0xff]  ;;  %s309_s13 = scalar_lea.vmem [#allocation8], %s701_s1  ;;  %s713_s27 = sshll.u32 %s1081_s21, 9 }
  0x4c   : > { %754 = vmatprep.subr.mxu0 %v335_v0  ;;  %v333_v2 = vld [vmem:[#allocation5 + $0x68] sm:$0xff]  ;;  %v332_v3 = vld [vmem:[#allocation5 + $0x60] sm:$0xff]  ;;  %v331_v5 = vld [vmem:[#allocation5 + $0x58] sm:$0xff]  ;;  %s574_s17 = sshll.u32 %s309_s13, 4  ;;  %s1293_s11 = scalar_lea.hbm %s1345_s5, %s713_s27  ;;  %s1288_s17 = int_to_ptr.vmem [resolvable:$true] %s574_s17 }
  0x4d   : > { %755 = vmatpush3.msra.mxu0 %v335_v0  ;;  %v316_v4 = vld [vmem:[%s1265_s24] sm:$0xff]  ;;  %v463_v6 = vld [vmem:[#allocation7 + $0x78] sm:$0xff]  ;;  %v462_v7 = vld [vmem:[#allocation7 + $0x70] sm:$0xff]  ;;  %s561_s10 = scalar_lea.sflag [#allocation4], %s1259_s9  ;;  %s1005_s15 = scalar_lea.vmem %s1288_s17, 512 }
  0x4e   : > { %756 = vmatprep.subr.mxu0 %v334_v1  ;;  %786 = vmatprep.mubr.f32.mxu0 %v316_v4  ;;  %v330_v8 = vld [vmem:[#allocation5 + $0x50] sm:$0xff]  ;;  %v461_v9 = vld [vmem:[#allocation7 + $0x68] sm:$0xff]  ;;  %v328_v11 = vld [vmem:[#allocation5 + $0x40] sm:$0xff]  ;;  %p1006_p1 = scmp.ne.s32.totalorder %s1288_s17, %s1005_s15  ;;  %s1096_s21 = smov [#allocation8]  }
  0x4f   : > { %757 = vmatpush3.msra.mxu0 %v334_v1  ;;  %792 = vmatprep.subr.mxu1 %v463_v6  ;;  %v329_v10 = vld [vmem:[#allocation5 + $0x48] sm:$0xff]  ;;  %v327_v12 = vld [vmem:[#allocation5 + $0x38] sm:$0xff]  ;;  %v326_v13 = vld [vmem:[#allocation5 + $0x30] sm:$0xff]  ;;  %s1009_s1 = sshll.u32 %s1096_s21, 4  ;;  %s1010_s1 = int_to_ptr.vmem [resolvable:$false] %s1009_s1 }
  0x50   : > { %758 = vmatprep.subr.mxu0 %v333_v2  ;;  %793 = vmatpush3.msra.mxu1 %v463_v6  ;;  %v325_v14 = vld [vmem:[#allocation5 + $0x28] sm:$0xff]  ;;  %v324_v15 = vld [vmem:[#allocation5 + $0x20] sm:$0xff]  ;;  %v323_v16 = vld [vmem:[#allocation5 + $0x18] sm:$0xff]  ;;  %p1007_p4 = pnand %p1006_p1, %p1229_p5  ;;  %s1011_s16 = scalar_lea.vmem %s1010_s1, 1024 }
  0x51   : > { %759 = vmatpush3.msra.mxu0 %v333_v2  ;;  %794 = vmatprep.subr.mxu1 %v462_v7  ;;  %v322_v17 = vld [vmem:[#allocation5 + $0x10] sm:$0xff]  ;;  %v321_v18 = vld [vmem:[#allocation5 + $0x8] sm:$0xff]  ;;  %v320_v19 = vld [vmem:[#allocation5] sm:$0xff]  ;;  %p1012_p8 = scmp.lt.s32.totalorder %s1288_s17, %s1010_s1  ;;  %p1013_p0 = scmp.lt.s32.totalorder %s1011_s16, %s1005_s15 }
  0x52   : > { %760 = vmatprep.subr.mxu0 %v332_v3  ;;  %795 = vmatpush3.msra.mxu1 %v462_v7  ;;  %v317_v20 = vld [vmem:[%s1265_s24 + $0x8] sm:$0xff]  ;;  %v318_v21 = vld [vmem:[%s1265_s24 + $0x10] sm:$0xff]  ;;  %v319_v22 = vld [vmem:[%s1265_s24 + $0x18] sm:$0xff]  ;;  %p1008_p6 = pneg %p1007_p4 }
  0x53   : > { %761 = vmatpush3.msra.mxu0 %v332_v3  ;;  %796 = vmatprep.subr.mxu1 %v461_v9  ;;  %v460_v23 = vld [vmem:[#allocation7 + $0x60] sm:$0xff]  ;;  %v459_v24 = vld [vmem:[#allocation7 + $0x58] sm:$0xff]  ;;  %v458_v25 = vld [vmem:[#allocation7 + $0x50] sm:$0xff]  ;;  %p1014_p10 = por %p1013_p0, %p1012_p8 }
  0x54   : > { %762 = vmatprep.subr.mxu0 %v331_v5  ;;  %797 = vmatpush3.msra.mxu1 %v461_v9  ;;  %v457_v26 = vld [vmem:[#allocation7 + $0x48] sm:$0xff]  ;;  %v456_v27 = vld [vmem:[#allocation7 + $0x40] sm:$0xff]  ;;  %v455_v28 = vld [vmem:[#allocation7 + $0x38] sm:$0xff] }
  0x55   : > { %763 = vmatpush3.msra.mxu0 %v331_v5  ;;  %798 = vmatprep.subr.mxu1 %v460_v23  ;;  %v454_v29 = vld [vmem:[#allocation7 + $0x30] sm:$0xff]  ;;  %v453_v30 = vld [vmem:[#allocation7 + $0x28] sm:$0xff]  ;;  %v452_v31 = vld [vmem:[#allocation7 + $0x20] sm:$0xff]  ;;  %p1015_p2 = pnand %p1014_p10, %p1008_p6 }
  0x56   : > { %764 = vmatprep.subr.mxu0 %v330_v8  ;;  %799 = vmatpush3.msra.mxu1 %v460_v23  ;;  %v451_v32 = vld [vmem:[#allocation7 + $0x18] sm:$0xff]  ;;  %v450_v33 = vld [vmem:[#allocation7 + $0x10] sm:$0xff]  ;;  %v449_v34 = vld [vmem:[#allocation7 + $0x8] sm:$0xff] }
  0x57   : > { %765 = vmatpush3.msra.mxu0 %v330_v8  ;;  %800 = vmatprep.subr.mxu1 %v459_v24  ;;  %v448_v35 = vld [vmem:[#allocation7] sm:$0xff] }
  0x58   : > { %766 = vmatprep.subr.mxu0 %v329_v10  ;;  %801 = vmatpush3.msra.mxu1 %v459_v24  ;;  %v705_v36 = vld [vmem:[%s1342_s2] ss:$0 sm:$0xff] }
  0x59   : > { %767 = vmatpush3.msra.mxu0 %v329_v10  ;;  %802 = vmatprep.subr.mxu1 %v458_v25  ;;  %v706_v1 = vld [vmem:[%s1344_s4] ss:$0 sm:$0xff] }
  0x5a   : > { %768 = vmatprep.subr.mxu0 %v328_v11  ;;  %803 = vmatpush3.msra.mxu1 %v458_v25 }
  0x5b   : > { %769 = vmatpush3.msra.mxu0 %v328_v11  ;;  %804 = vmatprep.subr.mxu1 %v457_v26 }
  0x5c   : > { %770 = vmatprep.subr.mxu0 %v327_v12  ;;  %805 = vmatpush3.msra.mxu1 %v457_v26 }
  0x5d   : > { %771 = vmatpush3.msra.mxu0 %v327_v12  ;;  %806 = vmatprep.subr.mxu1 %v456_v27 }
  0x5e   : > { %772 = vmatprep.subr.mxu0 %v326_v13  ;;  %807 = vmatpush3.msra.mxu1 %v456_v27 }
  0x5f   : > { %773 = vmatpush3.msra.mxu0 %v326_v13  ;;  %808 = vmatprep.subr.mxu1 %v455_v28 }
  0x60   : > { %774 = vmatprep.subr.mxu0 %v325_v14  ;;  %809 = vmatpush3.msra.mxu1 %v455_v28 }
  0x61   : > { %775 = vmatpush3.msra.mxu0 %v325_v14  ;;  %810 = vmatprep.subr.mxu1 %v454_v29 }
  0x62   : > { %776 = vmatprep.subr.mxu0 %v324_v15  ;;  %811 = vmatpush3.msra.mxu1 %v454_v29 }
  0x63   : > { %777 = vmatpush3.msra.mxu0 %v324_v15  ;;  %812 = vmatprep.subr.mxu1 %v453_v30 }
  0x64   : > { %778 = vmatprep.subr.mxu0 %v323_v16  ;;  %813 = vmatpush3.msra.mxu1 %v453_v30 }
  0x65   : > { %779 = vmatpush3.msra.mxu0 %v323_v16  ;;  %814 = vmatprep.subr.mxu1 %v452_v31 }
  0x66   : > { %780 = vmatprep.subr.mxu0 %v322_v17  ;;  %815 = vmatpush3.msra.mxu1 %v452_v31 }
  0x67   : > { %781 = vmatpush3.msra.mxu0 %v322_v17  ;;  %816 = vmatprep.subr.mxu1 %v451_v32 }
  0x68   : > { %782 = vmatprep.subr.mxu0 %v321_v18  ;;  %817 = vmatpush3.msra.mxu1 %v451_v32 }
  0x69   : > { %783 = vmatpush3.msra.mxu0 %v321_v18  ;;  %818 = vmatprep.subr.mxu1 %v450_v33 }
  0x6a   : > { %784 = vmatprep.subr.mxu0 %v320_v19  ;;  %819 = vmatpush3.msra.mxu1 %v450_v33 }
  0x6b   : > { %785 = vmatpush3.msra.mxu0 %v320_v19  ;;  %820 = vmatprep.subr.mxu1 %v449_v34 }
  0x6c   : > { %787 = vmatmul.mubr.f32.vlgmr.msra.gmra.mxu0 %v317_v20  ;;  %821 = vmatpush3.msra.mxu1 %v449_v34 }
  0x6d   : > { %789 = vmatprep.mubr.f32.mxu0 %v318_v21  ;;  %822 = vmatprep.subr.mxu1 %v448_v35 }
  0x6e   : > { %823 = vmatpush3.msra.mxu1 %v448_v35 }
  0x70   : > { %790 = vmatmul.mubr.f32.gmra.mxu0 %v319_v22 }
 0x12c   : > { %v788_v37 = vpop.f32.mrf.mxu0 }
 0x12d   : > { %v415_v38 = vadd.f32 %v788_v37, %v705_v36 }
 0x12e   : > { %v409_v39 = vpop.f32.mrf.mxu0 }
 0x12f   : > { %v433_v40 = vmul.f32 0.70710677, %v415_v38  ;;  %v410_v41 = vadd.f32 %v705_v36, %v409_v39  ;;  %v429_v55 = vmul.f32 0.5, %v415_v38 }
 0x130   : > { %v791_v42 = vpop.f32.mrf.mxu0 }
 0x131   : > { %917 = verf.f32 %v433_v40  ;;  %v432_v43 = vmul.f32 0.70710677, %v410_v41  ;;  %v425_v44 = vadd.f32 %v791_v42, %v705_v36  ;;  %v428_v52 = vmul.f32 0.5, %v410_v41 }
 0x132   : > { %v419_v45 = vpop.f32.mrf.mxu0 }
 0x133   : > { %919 = verf.f32 %v432_v43  ;;  %v435_v46 = vmul.f32 0.70710677, %v425_v44  ;;  %v420_v47 = vadd.f32 %v705_v36, %v419_v45  ;;  %v431_v62 = vmul.f32 0.5, %v425_v44 }
 0x135   : > { %921 = verf.f32 %v435_v46  ;;  %v434_v48 = vmul.f32 0.70710677, %v420_v47  ;;  %v430_v60 = vmul.f32 0.5, %v420_v47 }
 0x137   : > { %923 = verf.f32 %v434_v48 }
 0x13e   : > { %v918_v49 = vpop.eup %917 }
 0x13f   : > { %v441_v51 = vadd.f32 1.0, %v918_v49 }
 0x140   : > { %v920_v50 = vpop.eup %919 }
 0x141   : > { %v440_v53 = vadd.f32 1.0, %v920_v50  ;;  %v445_v58 = vmul.f32 %v441_v51, %v429_v55 }
 0x142   : > { %v922_v54 = vpop.eup %921 }
 0x143   : > { %v444_v56 = vmul.f32 %v440_v53, %v428_v52  ;;  %v443_v59 = vadd.f32 1.0, %v922_v54 }
 0x144   : > { %v924_v57 = vpop.eup %923 }
 0x145   : > { %824 = vmatprep.mubr.f32.mxu1 %v444_v56  ;;  %v442_v61 = vadd.f32 1.0, %v924_v57  ;;  %v447_v0 = vmul.f32 %v443_v59, %v431_v62 }
 0x146   : > { %825 = vmatmul.mubr.f32.vlgmr.msra.gmra.mxu1 %v445_v58 }
 0x147   : > { %v446_v63 = vmul.f32 %v442_v61, %v430_v60 }
 0x149   : > { %827 = vmatprep.mubr.f32.mxu1 %v446_v63 }
 0x14a   : > { %828 = vmatmul.mubr.f32.gmra.mxu1 %v447_v0 }
 0x206   : > { %v826_v2 = vpop.f32.mrf.mxu1 }
 0x207   : > { %v543_v3 = vadd.f32 %v826_v2, %v706_v1 }
 0x208   : > { %v537_v4 = vpop.f32.mrf.mxu1 }
 0x209   : > { %557 = vst [vmem:[%s309_s13 + $0x8] sm:$0xff] %v543_v3  ;;  %v538_v5 = vadd.f32 %v706_v1, %v537_v4 }
 0x20a   : > { %v829_v6 = vpop.f32.mrf.mxu1 }
 0x20b   : > { %556 = vst [vmem:[%s309_s13] sm:$0xff] %v538_v5  ;;  %v553_v7 = vadd.f32 %v829_v6, %v706_v1 }
 0x20c   : > { %v547_v8 = vpop.f32.mrf.mxu1 }
 0x20d   : > { %559 = vst [vmem:[%s309_s13 + $0x18] sm:$0xff] %v553_v7  ;;  %v548_v9 = vadd.f32 %v706_v1, %v547_v8 }
 0x20f   : > { %558 = vst [vmem:[%s309_s13 + $0x10] sm:$0xff] %v548_v9 }
 0x210   : > { %1018 = shalt.err (!%p1015_p2)
}
 0x211   : > { %s1019_s24 = scalar_lea.hbm %s1293_s11, 512  ;;  %s1023_s30 = scalar_lea.hbm %s1345_s5, 2048 }
 0x212   : > { %p1020_p9 = scmp.ne.s32.totalorder %s1293_s11, %s1019_s24  ;;  %p1024_p13 = scmp.lt.s32.totalorder %s1293_s11, %s1345_s5 }
 0x213   : > { %p1025_p7 = scmp.lt.s32.totalorder %s1023_s30, %s1019_s24 }
 0x214   : > { %p1021_p11 = pnand %p1020_p9, %p1229_p5 }
 0x215   : > { %p1026_p3 = por %p1025_p7, %p1024_p13 }
 0x216   : > { %p1022_p12 = pneg %p1021_p11 }
 0x218   : > { %p1027_p1 = pnand %p1026_p3, %p1022_p12 }
 0x21a   : > { %1030 = shalt.err (!%p1027_p1)
}
 0x21b   : > { %s1097_s27 = smov 128   ;;  %s1098_s8 = smov 8  }
 0x21c   : > { %840 = dma.vmem_to_hbm [thread:$0]  (%p1229_p5), %s1288_s17, 512, %s1293_s11, %s561_s10, %s1097_s27, %s1097_s27, %s1098_s8  }
 0x21d PF: > { %p862_p4 = scmp.ge.s32.totalorder %s1089_s23, 2  ;;  %s589_s6 = sand.u32 1, %s1069_s18  }
 0x21e   : > { %p1360_p6 = scmp.ne.s32.totalorder %s1352_s29, 0  ;;  %s590_s15 = scalar_lea.sflag [#allocation4], %s589_s6 }
 0x220   : > { %p854_p8 = pnand %p862_p4, %p1360_p6 }
 0x222   : > { %p855_p0 = pneg %p854_p8 }
 0x224   : > { %1064 = dma.done.wait (%p855_p0), %s590_s15, 512  }
 0x225   : > { %1066 = vsyncadd (%p855_p0), %s590_s15, 4294966784  ;;  %s22_s23 = sadd.s32 1, %s1089_s23   ;;  %s1361_s18 = smov %s1073_s19 }
 0x226   : > { %p19_p10 = scmp.ge.s32.totalorder %s22_s23, 6   ;;  %s1362_s19 = smov %s1077_s20 }
 0x227   : > { %s1363_s20 = smov %s1238_s14  ;;  %s1364_s21 = smov %s1085_s22 }
 0x228   : > { %s1365_s22 = smov %s1367_s25  ;;  %21 = sbr.rel (!%p19_p10) target bundleno = 9 (0x9), region = 98 }
 0x22d   :  { %595 = vsyncpa [#allocation3], 1 }
 0x22e   :  { %597 = vsyncpa [#allocation3 + $0x1], 1 }
 0x22f   :  { %598 = vsyncpa [#allocation6], 1 }
 0x230   :  { %599 = vsyncpa [#allocation4], 1 }
 0x231   :  { %601 = vsyncpa [#allocation4 + $0x1], 1 }

// kernel: tpu_custom_call.1
= control target key start
LH: loop header
LB: loop body
LE: loop exit
PB: predicated region body
PF: predicated region fallthrough
CT: control target
= control target key end

     0   :  { %s1340_s0 = inlined_call_operand.hbm [shape: f32[128,128], index: 0, kind: input, shape index: {}]   ;;  %s1341_s1 = inlined_call_operand.hbm [shape: f32[128,128], index: 1, kind: input, shape index: {}]   ;;  %s1342_s2 = inlined_call_operand.vmem [shape: f32[1,128], index: 2, kind: input, shape index: {}]   ;;  %s1343_s3 = inlined_call_operand.hbm [shape: f32[128,128], index: 3, kind: input, shape index: {}]   ;;  %s1344_s4 = inlined_call_operand.vmem [shape: f32[1,128], index: 4, kind: input, shape index: {}]   ;;  %s1345_s5 = inlined_call_operand.hbm [shape: f32[128,128], index: 5, kind: output, shape index: {}]  }
   0x1   :  { %1348 = sst [smem:[#allocation12_spill]] %s1341_s1 }
   0x2   :  { %10 = vsyncpa [#allocation3], 0 }
   0x3   :  { %12 = vsyncpa [#allocation3 + $0x1], 0 }
   0x4   :  { %13 = vsyncpa [#allocation6], 0 }
   0x5   :  { %14 = vsyncpa [#allocation4], 0 }
   0x6   :  { %16 = vsyncpa [#allocation4 + $0x1], 0  ;;  %s1129_s18 = smov 0   ;;  %s1131_s19 = smov 0  }
   0x7   :  { %s1133_s20 = smov 0   ;;  %s1135_s21 = smov 0  }
   0x8   :  { %s1137_s22 = smov 0   ;;  %s1139_s23 = smov 0  }
   0x9 LB: > { %s690_s24 = sadd.s32 4294967295, %s1089_s23   ;;  %s691_s25 = sadd.s32 4294967294, %s1089_s23   ;;  %s1089_s23 = sphi %s1139_s23, %s22_s23   ;;  %s1085_s22 = sphi %s1137_s22, %s1365_s22   ;;  %s1081_s21 = sphi %s1135_s21, %s1364_s21   ;;  %s1077_s20 = sphi %s1133_s20, %s1363_s20   ;;  %s1073_s19 = sphi %s1131_s19, %s1362_s19   ;;  %s1069_s18 = sphi %s1129_s18, %s1361_s18  }
   0xa   : > { %p54_p0 = scmp.ne.s32.totalorder %s1073_s19, %s1069_s18  ;;  %p1163_p1 = scmp.eq.s32.totalorder %s690_s24, 0 }
   0xb   : > { %p1167_p2 = scmp.eq.s32.totalorder %s690_s24, 3  ;;  %p183_p3 = scmp.eq.s32.totalorder %s691_s25, 3 }
   0xc   : > { %p1173_p4 = por %p1163_p1, %p54_p0  ;;  %p692_p5 = scmp.ge.s32.totalorder %s1089_s23, 1 }
   0xd   : > { %p1178_p6 = por %p183_p3, %p54_p0  ;;  %p190_p7 = scmp.lt.s32.totalorder %s1089_s23, 5 }
   0xe   : > { %s1091_s6 = smov [#allocation5]   ;;  %s1092_s9 = smov [#allocation7]  }
   0xf   : > { %s1352_s29 = scalar_select %p1178_p6, 1, 0 }
  0x10   : > { %p1183_p8 = pnand %p692_p5, %p190_p7  ;;  %s204_s7 = sshll.u32 %s1091_s6, 4  ;;  %s205_s7 = int_to_ptr.vmem [resolvable:$true] %s204_s7 }
  0x11   : > { %s226_s10 = sshll.u32 %s1092_s9, 4  ;;  %s936_s11 = scalar_lea.vmem %s205_s7, 2048  ;;  %s227_s10 = int_to_ptr.vmem [resolvable:$true] %s226_s10 }
  0x12   : > { %p842_p9 = pneg %p1183_p8  ;;  %p937_p12 = scmp.ne.s32.totalorder %s205_s7, %s936_s11 }
  0x13   : > { %p944_p3 = scmp.lt.s32.totalorder %s205_s7, %s205_s7  ;;  %p945_p5 = scmp.lt.s32.totalorder %s936_s11, %s936_s11 }
  0x14   : > { %p1191_p10 = pnand %p842_p9, %p1163_p1 }
  0x15   : > { %p946_p7 = por %p945_p5, %p944_p3 }
  0x16   : > { %p927_p11 = pneg %p1191_p10 }
  0x18   : > { %p939_p13 = pnand %p937_p12, %p927_p11 }
  0x1a   : > { %p940_p0 = pneg %p939_p13 }
  0x1c   : > { %p947_p9 = pnand %p946_p7, %p940_p0 }
  0x1e   : > { %950 = shalt.err (!%p947_p9)
}
  0x1f   : > { %s1346_s12 = smov 128   ;;  %s1347_s13 = smov 8  }
  0x20   : > { %s1355_s1 = sld [smem:[#allocation12_spill]]  ;;  %s962_s16 = scalar_lea.vmem %s227_s10, 2048 }
  0x21   : > { %p963_p12 = scmp.ne.s32.totalorder %s227_s10, %s962_s16  ;;  %p970_p0 = scmp.lt.s32.totalorder %s227_s10, %s227_s10 }
  0x22   : > { %p971_p5 = scmp.lt.s32.totalorder %s962_s16, %s962_s16 }
  0x23   : > { %p965_p13 = pnand %p963_p12, %p927_p11 }
  0x24   : > { %p972_p7 = por %p971_p5, %p970_p0 }
  0x25   : > { %p966_p3 = pneg %p965_p13 }
  0x26   : > { %845 = dma.hbm_to_vmem [thread:$0]  (!%p1191_p10), %s1355_s1, 2048, %s205_s7, [#allocation6], %s1346_s12, %s1346_s12, %s1347_s13  }
  0x27   : > { %p973_p9 = pnand %p972_p7, %p966_p3 }
  0x29   : > { %976 = shalt.err (!%p973_p9)
}
  0x2a   : > { %848 = dma.hbm_to_vmem [thread:$0]  (!%p1191_p10), %s1343_s3, 2048, %s227_s10, [#allocation6], %s1346_s12, %s1346_s12, %s1347_s13  }
  0x2b   : > { %s34_s25 = sadd.s32 1, %s1085_s22  ;;  %s41_s6 = sadd.s32 1, %s1077_s20 }
  0x2c   : > { %p36_p11 = scmp.ge.s32.totalorder %s34_s25, 4  ;;  %p48_p12 = scmp.ne.s32.totalorder %s1077_s20, %s1073_s19 }
  0x2d   : > { %p49_p13 = scmp.eq.s32.totalorder %s1089_s23, 0  ;;  %p859_p3 = scmp.lt.s32.totalorder %s1089_s23, 4 }
  0x2e   : > { %s1367_s25 = smov (%p36_p11, %s34_s25), 0  ;;  %p1229_p5 = por %p1167_p2, %p48_p12 }
  0x2f   : > { %p50_p0 = por %p49_p13, %p48_p12  ;;  %s38_s8 = ssub.s32 %s1085_s22, %s1367_s25 }
  0x30   : > { %s243_s9 = sand.u32 1, %s1077_s20   ;;  %p39_p7 = scmp.eq.s32.totalorder %s38_s8, 0 }
  0x31   : > { %s697_s10 = sshll.u32 %s243_s9, 5  ;;  %s712_s11 = sshll.u32 %s1085_s22, 9 }
  0x32   : > { %s1238_s14 = scalar_select %p39_p7, %s1077_s20, %s41_s6  }
  0x33   : > { %s253_s17 = scalar_lea.hbm %s1340_s0, %s712_s11  ;;  %s247_s24 = scalar_lea.vmem [#allocation2], %s697_s10 }
  0x34   : > { %s254_s12 = sshll.u32 %s247_s24, 4  ;;  %p1245_p10 = pnand %p859_p3, %p50_p0  ;;  %s255_s12 = int_to_ptr.vmem [resolvable:$true] %s254_s12 }
  0x35   : > { %s244_s13 = scalar_lea.sflag [#allocation3], %s243_s9  ;;  %s990_s8 = scalar_lea.vmem %s255_s12, 512 }
  0x36   : > { %p979_p2 = pneg %p1245_p10  ;;  %p991_p9 = scmp.ne.s32.totalorder %s255_s12, %s990_s8 }
  0x37   : > { %s1095_s6 = smov [#allocation2]  }
  0x38   : > { %p993_p11 = pnand %p991_p9, %p979_p2  ;;  %s995_s1 = sshll.u32 %s1095_s6, 4  ;;  %s996_s1 = int_to_ptr.vmem [resolvable:$false] %s995_s1 }
  0x39   : > { %s997_s11 = scalar_lea.vmem %s996_s1, 1024  ;;  %p998_p13 = scmp.lt.s32.totalorder %s255_s12, %s996_s1 }
  0x3a   : > { %p994_p12 = pneg %p993_p11  ;;  %p999_p7 = scmp.lt.s32.totalorder %s997_s11, %s990_s8 }
  0x3c   : > { %p1000_p6 = por %p999_p7, %p998_p13 }
  0x3e   : > { %p1001_p3 = pnand %p1000_p6, %p994_p12 }
  0x40   : > { %1004 = shalt.err (!%p1001_p3)
}
  0x41   : > { %s1358_s10 = smov 8   ;;  %s1359_s15 = smov 128  }
  0x42   : > { %852 = dma.hbm_to_vmem [thread:$0]  (!%p1245_p10), %s253_s17, 512, %s255_s12, %s244_s13, %s1359_s15, %s1359_s15, %s1358_s10  }
  0x43   : > { %266 = sbr.rel (%p1183_p8) target bundleno = 541 (0x21d), region = 40  ;;  %s1259_s9 = sand.u32 (!%p1183_p8), 1, %s1073_s19  }
  0x44   : > { %s701_s1 = sshll.u32 (!%p1183_p8), %s1259_s9, 5  ;;  %s269_s16 = scalar_lea.sflag (!%p1183_p8), [#allocation3], %s1259_s9 }
  0x45   : > { %s1265_s24 = scalar_lea.vmem (!%p1183_p8), [#allocation2], %s701_s1 }
  0x48   : > { %1056 = dma.done.wait (%p1173_p4), %s269_s16, 512  }
  0x49   : > { %1058 = vsyncadd (%p1173_p4), %s269_s16, 4294966784 }
  0x4a   : > { %1060 = dma.done.wait (%p1163_p1), [#allocation6], 4096  }
  0x4b   : > { %1062 = vsyncadd (%p1163_p1), [#allocation6], 4294963200  ;;  %v335_v0 = vld [vmem:[#allocation5 + $0x78] sm:$0xff]  ;;  %v334_v1 = vld [vmem:[#allocation5 + $0x70] sm:$0xff]  ;;  %s309_s13 = scalar_lea.vmem [#allocation8], %s701_s1  ;;  %s713_s27 = sshll.u32 %s1081_s21, 9 }
  0x4c   : > { %754 = vmatprep.subr.mxu0 %v335_v0  ;;  %v333_v2 = vld [vmem:[#allocation5 + $0x68] sm:$0xff]  ;;  %v332_v3 = vld [vmem:[#allocation5 + $0x60] sm:$0xff]  ;;  %v331_v5 = vld [vmem:[#allocation5 + $0x58] sm:$0xff]  ;;  %s574_s17 = sshll.u32 %s309_s13, 4  ;;  %s1293_s11 = scalar_lea.hbm %s1345_s5, %s713_s27  ;;  %s1288_s17 = int_to_ptr.vmem [resolvable:$true] %s574_s17 }
  0x4d   : > { %755 = vmatpush3.msra.mxu0 %v335_v0  ;;  %v316_v4 = vld [vmem:[%s1265_s24] sm:$0xff]  ;;  %v463_v6 = vld [vmem:[#allocation7 + $0x78] sm:$0xff]  ;;  %v462_v7 = vld [vmem:[#allocation7 + $0x70] sm:$0xff]  ;;  %s561_s10 = scalar_lea.sflag [#allocation4], %s1259_s9  ;;  %s1005_s15 = scalar_lea.vmem %s1288_s17, 512 }
  0x4e   : > { %756 = vmatprep.subr.mxu0 %v334_v1  ;;  %786 = vmatprep.mubr.f32.mxu0 %v316_v4  ;;  %v330_v8 = vld [vmem:[#allocation5 + $0x50] sm:$0xff]  ;;  %v461_v9 = vld [vmem:[#allocation7 + $0x68] sm:$0xff]  ;;  %v328_v11 = vld [vmem:[#allocation5 + $0x40] sm:$0xff]  ;;  %p1006_p1 = scmp.ne.s32.totalorder %s1288_s17, %s1005_s15  ;;  %s1096_s21 = smov [#allocation8]  }
  0x4f   : > { %757 = vmatpush3.msra.mxu0 %v334_v1  ;;  %792 = vmatprep.subr.mxu1 %v463_v6  ;;  %v329_v10 = vld [vmem:[#allocation5 + $0x48] sm:$0xff]  ;;  %v327_v12 = vld [vmem:[#allocation5 + $0x38] sm:$0xff]  ;;  %v326_v13 = vld [vmem:[#allocation5 + $0x30] sm:$0xff]  ;;  %s1009_s1 = sshll.u32 %s1096_s21, 4  ;;  %s1010_s1 = int_to_ptr.vmem [resolvable:$false] %s1009_s1 }
  0x50   : > { %758 = vmatprep.subr.mxu0 %v333_v2  ;;  %793 = vmatpush3.msra.mxu1 %v463_v6  ;;  %v325_v14 = vld [vmem:[#allocation5 + $0x28] sm:$0xff]  ;;  %v324_v15 = vld [vmem:[#allocation5 + $0x20] sm:$0xff]  ;;  %v323_v16 = vld [vmem:[#allocation5 + $0x18] sm:$0xff]  ;;  %p1007_p4 = pnand %p1006_p1, %p1229_p5  ;;  %s1011_s16 = scalar_lea.vmem %s1010_s1, 1024 }
  0x51   : > { %759 = vmatpush3.msra.mxu0 %v333_v2  ;;  %794 = vmatprep.subr.mxu1 %v462_v7  ;;  %v322_v17 = vld [vmem:[#allocation5 + $0x10] sm:$0xff]  ;;  %v321_v18 = vld [vmem:[#allocation5 + $0x8] sm:$0xff]  ;;  %v320_v19 = vld [vmem:[#allocation5] sm:$0xff]  ;;  %p1012_p8 = scmp.lt.s32.totalorder %s1288_s17, %s1010_s1  ;;  %p1013_p0 = scmp.lt.s32.totalorder %s1011_s16, %s1005_s15 }
  0x52   : > { %760 = vmatprep.subr.mxu0 %v332_v3  ;;  %795 = vmatpush3.msra.mxu1 %v462_v7  ;;  %v317_v20 = vld [vmem:[%s1265_s24 + $0x8] sm:$0xff]  ;;  %v318_v21 = vld [vmem:[%s1265_s24 + $0x10] sm:$0xff]  ;;  %v319_v22 = vld [vmem:[%s1265_s24 + $0x18] sm:$0xff]  ;;  %p1008_p6 = pneg %p1007_p4 }
  0x53   : > { %761 = vmatpush3.msra.mxu0 %v332_v3  ;;  %796 = vmatprep.subr.mxu1 %v461_v9  ;;  %v460_v23 = vld [vmem:[#allocation7 + $0x60] sm:$0xff]  ;;  %v459_v24 = vld [vmem:[#allocation7 + $0x58] sm:$0xff]  ;;  %v458_v25 = vld [vmem:[#allocation7 + $0x50] sm:$0xff]  ;;  %p1014_p10 = por %p1013_p0, %p1012_p8 }
  0x54   : > { %762 = vmatprep.subr.mxu0 %v331_v5  ;;  %797 = vmatpush3.msra.mxu1 %v461_v9  ;;  %v457_v26 = vld [vmem:[#allocation7 + $0x48] sm:$0xff]  ;;  %v456_v27 = vld [vmem:[#allocation7 + $0x40] sm:$0xff]  ;;  %v455_v28 = vld [vmem:[#allocation7 + $0x38] sm:$0xff] }
  0x55   : > { %763 = vmatpush3.msra.mxu0 %v331_v5  ;;  %798 = vmatprep.subr.mxu1 %v460_v23  ;;  %v454_v29 = vld [vmem:[#allocation7 + $0x30] sm:$0xff]  ;;  %v453_v30 = vld [vmem:[#allocation7 + $0x28] sm:$0xff]  ;;  %v452_v31 = vld [vmem:[#allocation7 + $0x20] sm:$0xff]  ;;  %p1015_p2 = pnand %p1014_p10, %p1008_p6 }
  0x56   : > { %764 = vmatprep.subr.mxu0 %v330_v8  ;;  %799 = vmatpush3.msra.mxu1 %v460_v23  ;;  %v451_v32 = vld [vmem:[#allocation7 + $0x18] sm:$0xff]  ;;  %v450_v33 = vld [vmem:[#allocation7 + $0x10] sm:$0xff]  ;;  %v449_v34 = vld [vmem:[#allocation7 + $0x8] sm:$0xff] }
  0x57   : > { %765 = vmatpush3.msra.mxu0 %v330_v8  ;;  %800 = vmatprep.subr.mxu1 %v459_v24  ;;  %v448_v35 = vld [vmem:[#allocation7] sm:$0xff] }
  0x58   : > { %766 = vmatprep.subr.mxu0 %v329_v10  ;;  %801 = vmatpush3.msra.mxu1 %v459_v24  ;;  %v705_v36 = vld [vmem:[%s1342_s2] ss:$0 sm:$0xff] }
  0x59   : > { %767 = vmatpush3.msra.mxu0 %v329_v10  ;;  %802 = vmatprep.subr.mxu1 %v458_v25  ;;  %v706_v1 = vld [vmem:[%s1344_s4] ss:$0 sm:$0xff] }
  0x5a   : > { %768 = vmatprep.subr.mxu0 %v328_v11  ;;  %803 = vmatpush3.msra.mxu1 %v458_v25 }
  0x5b   : > { %769 = vmatpush3.msra.mxu0 %v328_v11  ;;  %804 = vmatprep.subr.mxu1 %v457_v26 }
  0x5c   : > { %770 = vmatprep.subr.mxu0 %v327_v12  ;;  %805 = vmatpush3.msra.mxu1 %v457_v26 }
  0x5d   : > { %771 = vmatpush3.msra.mxu0 %v327_v12  ;;  %806 = vmatprep.subr.mxu1 %v456_v27 }
  0x5e   : > { %772 = vmatprep.subr.mxu0 %v326_v13  ;;  %807 = vmatpush3.msra.mxu1 %v456_v27 }
  0x5f   : > { %773 = vmatpush3.msra.mxu0 %v326_v13  ;;  %808 = vmatprep.subr.mxu1 %v455_v28 }
  0x60   : > { %774 = vmatprep.subr.mxu0 %v325_v14  ;;  %809 = vmatpush3.msra.mxu1 %v455_v28 }
  0x61   : > { %775 = vmatpush3.msra.mxu0 %v325_v14  ;;  %810 = vmatprep.subr.mxu1 %v454_v29 }
  0x62   : > { %776 = vmatprep.subr.mxu0 %v324_v15  ;;  %811 = vmatpush3.msra.mxu1 %v454_v29 }
  0x63   : > { %777 = vmatpush3.msra.mxu0 %v324_v15  ;;  %812 = vmatprep.subr.mxu1 %v453_v30 }
  0x64   : > { %778 = vmatprep.subr.mxu0 %v323_v16  ;;  %813 = vmatpush3.msra.mxu1 %v453_v30 }
  0x65   : > { %779 = vmatpush3.msra.mxu0 %v323_v16  ;;  %814 = vmatprep.subr.mxu1 %v452_v31 }
  0x66   : > { %780 = vmatprep.subr.mxu0 %v322_v17  ;;  %815 = vmatpush3.msra.mxu1 %v452_v31 }
  0x67   : > { %781 = vmatpush3.msra.mxu0 %v322_v17  ;;  %816 = vmatprep.subr.mxu1 %v451_v32 }
  0x68   : > { %782 = vmatprep.subr.mxu0 %v321_v18  ;;  %817 = vmatpush3.msra.mxu1 %v451_v32 }
  0x69   : > { %783 = vmatpush3.msra.mxu0 %v321_v18  ;;  %818 = vmatprep.subr.mxu1 %v450_v33 }
  0x6a   : > { %784 = vmatprep.subr.mxu0 %v320_v19  ;;  %819 = vmatpush3.msra.mxu1 %v450_v33 }
  0x6b   : > { %785 = vmatpush3.msra.mxu0 %v320_v19  ;;  %820 = vmatprep.subr.mxu1 %v449_v34 }
  0x6c   : > { %787 = vmatmul.mubr.f32.vlgmr.msra.gmra.mxu0 %v317_v20  ;;  %821 = vmatpush3.msra.mxu1 %v449_v34 }
  0x6d   : > { %789 = vmatprep.mubr.f32.mxu0 %v318_v21  ;;  %822 = vmatprep.subr.mxu1 %v448_v35 }
  0x6e   : > { %823 = vmatpush3.msra.mxu1 %v448_v35 }
  0x70   : > { %790 = vmatmul.mubr.f32.gmra.mxu0 %v319_v22 }
 0x12c   : > { %v788_v37 = vpop.f32.mrf.mxu0 }
 0x12d   : > { %v415_v38 = vadd.f32 %v788_v37, %v705_v36 }
 0x12e   : > { %v409_v39 = vpop.f32.mrf.mxu0 }
 0x12f   : > { %v433_v40 = vmul.f32 0.70710677, %v415_v38  ;;  %v410_v41 = vadd.f32 %v705_v36, %v409_v39  ;;  %v429_v55 = vmul.f32 0.5, %v415_v38 }
 0x130   : > { %v791_v42 = vpop.f32.mrf.mxu0 }
 0x131   : > { %917 = verf.f32 %v433_v40  ;;  %v432_v43 = vmul.f32 0.70710677, %v410_v41  ;;  %v425_v44 = vadd.f32 %v791_v42, %v705_v36  ;;  %v428_v52 = vmul.f32 0.5, %v410_v41 }
 0x132   : > { %v419_v45 = vpop.f32.mrf.mxu0 }
 0x133   : > { %919 = verf.f32 %v432_v43  ;;  %v435_v46 = vmul.f32 0.70710677, %v425_v44  ;;  %v420_v47 = vadd.f32 %v705_v36, %v419_v45  ;;  %v431_v62 = vmul.f32 0.5, %v425_v44 }
 0x135   : > { %921 = verf.f32 %v435_v46  ;;  %v434_v48 = vmul.f32 0.70710677, %v420_v47  ;;  %v430_v60 = vmul.f32 0.5, %v420_v47 }
 0x137   : > { %923 = verf.f32 %v434_v48 }
 0x13e   : > { %v918_v49 = vpop.eup %917 }
 0x13f   : > { %v441_v51 = vadd.f32 1.0, %v918_v49 }
 0x140   : > { %v920_v50 = vpop.eup %919 }
 0x141   : > { %v440_v53 = vadd.f32 1.0, %v920_v50  ;;  %v445_v58 = vmul.f32 %v441_v51, %v429_v55 }
 0x142   : > { %v922_v54 = vpop.eup %921 }
 0x143   : > { %v444_v56 = vmul.f32 %v440_v53, %v428_v52  ;;  %v443_v59 = vadd.f32 1.0, %v922_v54 }
 0x144   : > { %v924_v57 = vpop.eup %923 }
 0x145   : > { %824 = vmatprep.mubr.f32.mxu1 %v444_v56  ;;  %v442_v61 = vadd.f32 1.0, %v924_v57  ;;  %v447_v0 = vmul.f32 %v443_v59, %v431_v62 }
 0x146   : > { %825 = vmatmul.mubr.f32.vlgmr.msra.gmra.mxu1 %v445_v58 }
 0x147   : > { %v446_v63 = vmul.f32 %v442_v61, %v430_v60 }
 0x149   : > { %827 = vmatprep.mubr.f32.mxu1 %v446_v63 }
 0x14a   : > { %828 = vmatmul.mubr.f32.gmra.mxu1 %v447_v0 }
 0x206   : > { %v826_v2 = vpop.f32.mrf.mxu1 }
 0x207   : > { %v543_v3 = vadd.f32 %v826_v2, %v706_v1 }
 0x208   : > { %v537_v4 = vpop.f32.mrf.mxu1 }
 0x209   : > { %557 = vst [vmem:[%s309_s13 + $0x8] sm:$0xff] %v543_v3  ;;  %v538_v5 = vadd.f32 %v706_v1, %v537_v4 }
 0x20a   : > { %v829_v6 = vpop.f32.mrf.mxu1 }
 0x20b   : > { %556 = vst [vmem:[%s309_s13] sm:$0xff] %v538_v5  ;;  %v553_v7 = vadd.f32 %v829_v6, %v706_v1 }
 0x20c   : > { %v547_v8 = vpop.f32.mrf.mxu1 }
 0x20d   : > { %559 = vst [vmem:[%s309_s13 + $0x18] sm:$0xff] %v553_v7  ;;  %v548_v9 = vadd.f32 %v706_v1, %v547_v8 }
 0x20f   : > { %558 = vst [vmem:[%s309_s13 + $0x10] sm:$0xff] %v548_v9 }
 0x210   : > { %1018 = shalt.err (!%p1015_p2)
}
 0x211   : > { %s1019_s24 = scalar_lea.hbm %s1293_s11, 512  ;;  %s1023_s30 = scalar_lea.hbm %s1345_s5, 2048 }
 0x212   : > { %p1020_p9 = scmp.ne.s32.totalorder %s1293_s11, %s1019_s24  ;;  %p1024_p13 = scmp.lt.s32.totalorder %s1293_s11, %s1345_s5 }
 0x213   : > { %p1025_p7 = scmp.lt.s32.totalorder %s1023_s30, %s1019_s24 }
 0x214   : > { %p1021_p11 = pnand %p1020_p9, %p1229_p5 }
 0x215   : > { %p1026_p3 = por %p1025_p7, %p1024_p13 }
 0x216   : > { %p1022_p12 = pneg %p1021_p11 }
 0x218   : > { %p1027_p1 = pnand %p1026_p3, %p1022_p12 }
 0x21a   : > { %1030 = shalt.err (!%p1027_p1)
}
 0x21b   : > { %s1097_s27 = smov 128   ;;  %s1098_s8 = smov 8  }
 0x21c   : > { %840 = dma.vmem_to_hbm [thread:$0]  (%p1229_p5), %s1288_s17, 512, %s1293_s11, %s561_s10, %s1097_s27, %s1097_s27, %s1098_s8  }
 0x21d PF: > { %p862_p4 = scmp.ge.s32.totalorder %s1089_s23, 2  ;;  %s589_s6 = sand.u32 1, %s1069_s18  }
 0x21e   : > { %p1360_p6 = scmp.ne.s32.totalorder %s1352_s29, 0  ;;  %s590_s15 = scalar_lea.sflag [#allocation4], %s589_s6 }
 0x220   : > { %p854_p8 = pnand %p862_p4, %p1360_p6 }
 0x222   : > { %p855_p0 = pneg %p854_p8 }
 0x224   : > { %1064 = dma.done.wait (%p855_p0), %s590_s15, 512  }
 0x225   : > { %1066 = vsyncadd (%p855_p0), %s590_s15, 4294966784  ;;  %s22_s23 = sadd.s32 1, %s1089_s23   ;;  %s1361_s18 = smov %s1073_s19 }
 0x226   : > { %p19_p10 = scmp.ge.s32.totalorder %s22_s23, 6   ;;  %s1362_s19 = smov %s1077_s20 }
 0x227   : > { %s1363_s20 = smov %s1238_s14  ;;  %s1364_s21 = smov %s1085_s22 }
 0x228   : > { %s1365_s22 = smov %s1367_s25  ;;  %21 = sbr.rel (!%p19_p10) target bundleno = 9 (0x9), region = 98 }
 0x22d   :  { %595 = vsyncpa [#allocation3], 1 }
 0x22e   :  { %597 = vsyncpa [#allocation3 + $0x1], 1 }
 0x22f   :  { %598 = vsyncpa [#allocation6], 1 }
 0x230   :  { %599 = vsyncpa [#allocation4], 1 }
 0x231   :  { %601 = vsyncpa [#allocation4 + $0x1], 1 }

</bundles_post_ra>
